<compile_context>
chip_gen: v7x
topology: tpu7x:2x2x1
jax: 0.10.0
libtpu: 0.0.40
codegen_flags: <defaults>
</compile_context>

<pallas_src>
import functools

import jax
import jax.numpy as jnp
from jax.experimental import pallas as pl
from jax.experimental.pallas import tpu as pltpu


def _round_up(x, m):
    return ((x + m - 1) // m) * m


def _vmem_capacity_bytes():
    try:
        return int(pltpu.get_tpu_info().vmem_capacity_bytes)
    except Exception:
        return 64 * 1024 * 1024  # conservative fallback: v7x per-TensorCore VMEM


def _working_set_bytes(tm, K, E, in_item, out_item):
    # Accurate VMEM footprint including (8,128) layout padding of every buffer.
    lane = lambda n: _round_up(n, 128)
    subl = lambda n: _round_up(n, 8)
    return (2 * subl(tm) * lane(K) * in_item      # patches tile, double-buffered
            + 2 * subl(tm) * lane(E) * out_item   # output tile, double-buffered
            + 2 * subl(K) * lane(E) * in_item     # weight (constant index_map, 2 bufs)
            + 2 * subl(1) * lane(E) * 4)          # bias (f32)


def _patch_embed_kernel(x_ref, w_ref, b_ref, o_ref):
    # x_ref: (TM, K)  tile of flattened patches
    # w_ref: (K, E)   projection weight (VMEM-resident across all grid steps)
    # b_ref: (1, E)   bias, f32
    # o_ref: (TM, E)
    acc = jnp.dot(x_ref[...], w_ref[...], preferred_element_type=jnp.float32)
    o_ref[...] = (acc + b_ref[...]).astype(o_ref.dtype)


def patch_embedding(x, weight, bias, *, patch_size, tm=None,
                    compute_dtype=None, out_dtype=None):
    """
    x:      (B, C, H, W)   NCHW, like PyTorch
    weight: (E, C, p, p)   PyTorch Conv2d weight layout
    bias:   (E,)
    returns (B, (H//p)*(W//p), E)  ==  rearrange(conv(x), 'b c h w -> b (h w) c')

    compute_dtype=jnp.bfloat16 halves both input and (dominant) output HBM
    traffic; out_dtype defaults to compute_dtype (or x.dtype if unset).
    """
    B, C, H, W = x.shape
    E = weight.shape[0]
    p = patch_size
    Hp, Wp = H // p, W // p
    n_patches = Hp * Wp

    if out_dtype is None:
        out_dtype = compute_dtype if compute_dtype is not None else x.dtype

    # Patch extraction: (B,C,Hp,p,Wp,p) -> (B,Hp,Wp,C,p,p) -> (M, C*p*p).
    # (c, kh, kw) flatten order matches the conv-weight reshape below.
    xp = jnp.transpose(x.reshape(B, C, Hp, p, Wp, p), (0, 2, 4, 1, 3, 5))
    patches = xp.reshape(B * n_patches, C * p * p)

    w = weight.reshape(E, C * p * p).T          # (K, E): patches @ w == conv out
    b = bias.reshape(1, E).astype(jnp.float32)  # add in f32 regardless of compute_dtype

    if compute_dtype is not None:
        patches = patches.astype(compute_dtype)
        w = w.astype(compute_dtype)

    M, K = patches.shape
    in_item = jnp.dtype(patches.dtype).itemsize
    out_item = jnp.dtype(out_dtype).itemsize

    vmem_cap = _vmem_capacity_bytes()
    big_vmem = vmem_cap >= 96 * 1024 * 1024            # v5e/v6e: 128 MiB physical
    vmem_budget = (100 if big_vmem else 48) * 1024 * 1024
    if tm is None:
        tm = 2048 if big_vmem else 1024

    # Guarantee >=2 grid steps (keeps both v7x TensorCores streaming) and a
    # sublane-aligned tile; shrink if the layout-padded working set would blow
    # the per-generation VMEM budget.
    tm = min(tm, _round_up(max(pl.cdiv(M, 2), 1), 8))
    tm = max(8, min(tm, _round_up(M, 8)))
    while tm > 8 and _working_set_bytes(tm, K, E, in_item, out_item) > int(0.9 * vmem_budget):
        tm = max(8, _round_up(tm // 2, 8))

    ws = _working_set_bytes(tm, K, E, in_item, out_item)
    vmem_limit = int(min(max(2 * ws, 32 * 1024 * 1024), vmem_budget))

    grid = (pl.cdiv(M, tm),)   # ragged last tile -> masked stores; no pad, no slice

    cost = pl.CostEstimate(
        flops=2 * M * K * E,
        transcendentals=0,
        bytes_accessed=in_item * (M * K + K * E) + 4 * E + out_item * M * E,
    )

    out = pl.pallas_call(
        _patch_embed_kernel,
        out_shape=jax.ShapeDtypeStruct((M, E), out_dtype),
        grid_spec=pltpu.PrefetchScalarGridSpec(
            num_scalar_prefetch=0,
            grid=grid,
            in_specs=[
                pl.BlockSpec((tm, K), lambda i: (i, 0)),   # streamed per tile
                pl.BlockSpec((K, E), lambda i: (0, 0)),    # DMA'd once, VMEM-resident
                pl.BlockSpec((1, E), lambda i: (0, 0)),    # bias, resident
            ],
            out_specs=pl.BlockSpec((tm, E), lambda i: (i, 0)),
        ),
        compiler_params=pltpu.CompilerParams(
            dimension_semantics=("parallel",),             # shard tiles across TCs
            vmem_limit_bytes=vmem_limit,
            allow_input_fusion=[True, False, False],       # fuse patch transpose into op 0
        ),
        cost_estimate=cost,
    )(patches, w, b)

    # Output is exactly (M, E): the reshape back to (B, num_patches, E) is free.
    return out.reshape(B, n_patches, E)


if __name__ == "__main__":
    # Small, DiT-consistent shapes.
    B, C, H, W = 2, 4, 16, 16
    patch_size = 4
    n_embd = 32

    key = jax.random.PRNGKey(0)
    kx, kw, kb = jax.random.split(key, 3)

    x = jax.random.normal(kx, (B, C, H, W), dtype=jnp.float32)
    # Synthetic Conv2d params (shapes from nn.Conv2d(C, n_embd, p, p)).
    weight = jax.random.normal(kw, (n_embd, C, patch_size, patch_size), dtype=jnp.float32) * 0.02
    bias = jax.random.normal(kb, (n_embd,), dtype=jnp.float32) * 0.02

    # Reference: strided conv + 'b c h w -> b (h w) c'.
    ref = jax.lax.conv_general_dilated(
        x, weight,
        window_strides=(patch_size, patch_size),
        padding="VALID",
        dimension_numbers=("NCHW", "OIHW", "NCHW"),
    ) + bias[None, :, None, None]
    ref = jnp.transpose(ref, (0, 2, 3, 1)).reshape(B, -1, n_embd)

    # f32 path (matches PyTorch default semantics).
    fwd = jax.jit(functools.partial(patch_embedding, patch_size=patch_size))
    out = fwd(x, weight, bias)
    jax.block_until_ready(out)
    assert out.shape == (B, (H // patch_size) * (W // patch_size), n_embd)
    assert jnp.allclose(out, ref, atol=1e-4, rtol=1e-4)

    # bf16 compute + bf16 output (halves the dominant HBM write traffic).
    fwd_bf16 = jax.jit(functools.partial(patch_embedding, patch_size=patch_size,
                                         compute_dtype=jnp.bfloat16))
    out_bf16 = fwd_bf16(x, weight, bias)
    jax.block_until_ready(out_bf16)
    assert out_bf16.dtype == jnp.bfloat16
    assert jnp.allclose(out_bf16.astype(jnp.float32), ref, atol=3e-2, rtol=3e-2)

    print("KERNEL_OK")
</pallas_src>

<mosaic_0001>
module attributes {stable_mosaic.version = 11 : i64} {
  func.func @_patch_embed_kernel(%arg0: i32, %arg1: memref<16x64xf32, #tpu.memory_space<vmem>>, %arg2: memref<64x32xf32, #tpu.memory_space<vmem>>, %arg3: memref<1x32xf32, #tpu.memory_space<vmem>>, %arg4: memref<16x32xf32, #tpu.memory_space<vmem>>) attributes {dimension_semantics = [#tpu.dimension_semantics<parallel>], iteration_bounds = array<i64: 2>, scalar_prefetch = 0 : i64, scratch_operands = 0 : i64, tpu.core_type = #tpu.core_type<tc>, window_params = [{transform_indices = @transform_0, window_bounds = array<i64: 16, 64>}, {pipeline_mode = #tpu.pipeline_mode<synchronous>, transform_indices = @transform_1, window_bounds = array<i64: 64, 32>}, {pipeline_mode = #tpu.pipeline_mode<synchronous>, transform_indices = @transform_2, window_bounds = array<i64: 1, 32>}, {transform_indices = @transform_3, window_bounds = array<i64: 16, 32>}]} {
    %c0 = arith.constant 0 : index
    %c0_0 = arith.constant 0 : index
    %0 = vector.load %arg1[%c0, %c0_0] : memref<16x64xf32, #tpu.memory_space<vmem>>, vector<16x64xf32>
    %c0_1 = arith.constant 0 : index
    %c0_2 = arith.constant 0 : index
    %1 = vector.load %arg2[%c0_1, %c0_2] : memref<64x32xf32, #tpu.memory_space<vmem>>, vector<64x32xf32>
    %cst = arith.constant dense<0.000000e+00> : vector<16x32xf32>
    %2 = tpu.matmul %0, %1, %cst {dimension_numbers = #tpu.dot_dimension_numbers<[1], [0], [0], [1], [0, 0, 1, 1], [], []>} : vector<16x64xf32>, vector<64x32xf32>, vector<16x32xf32> -> vector<16x32xf32>
    %c0_3 = arith.constant 0 : index
    %c0_4 = arith.constant 0 : index
    %3 = vector.load %arg3[%c0_3, %c0_4] : memref<1x32xf32, #tpu.memory_space<vmem>>, vector<1x32xf32>
    %4 = vector.broadcast %3 : vector<1x32xf32> to vector<16x32xf32>
    %5 = arith.addf %2, %4 : vector<16x32xf32>
    %c0_5 = arith.constant 0 : index
    %c0_6 = arith.constant 0 : index
    %6 = vector.load %arg4[%c0_5, %c0_6] : memref<16x32xf32, #tpu.memory_space<vmem>>, vector<16x32xf32>
    tpu.vector_store %arg4[%c0_5, %c0_6], %5 {strides = array<i32>} : memref<16x32xf32, #tpu.memory_space<vmem>>, vector<16x32xf32>,
    return
  }
  func.func @transform_0(%arg0: i32) -> (i32, i32) {
    %c0_i32 = arith.constant 0 : i32
    %c0_i32_0 = arith.constant 0 : i32
    return %arg0, %c0_i32 : i32, i32
  }
  func.func @transform_1(%arg0: i32) -> (i32, i32) {
    %c0_i32 = arith.constant 0 : i32
    %c0_i32_0 = arith.constant 0 : i32
    %c0_i32_1 = arith.constant 0 : i32
    return %c0_i32, %c0_i32_0 : i32, i32
  }
  func.func @transform_2(%arg0: i32) -> (i32, i32) {
    %c0_i32 = arith.constant 0 : i32
    %c0_i32_0 = arith.constant 0 : i32
    %c0_i32_1 = arith.constant 0 : i32
    return %c0_i32, %c0_i32_0 : i32, i32
  }
  func.func @transform_3(%arg0: i32) -> (i32, i32) {
    %c0_i32 = arith.constant 0 : i32
    %c0_i32_0 = arith.constant 0 : i32
    return %arg0, %c0_i32 : i32, i32
  }
}

</mosaic_0001>

<bundles_post_ra>
// kernel: patch_embedding.1
= control target key start
LH: loop header
LB: loop body
LE: loop exit
PB: predicated region body
PF: predicated region fallthrough
CT: control target
= control target key end

     0   :  { %8 = vsyncpa [#allocation3], 0  ;;  %s668_s0 = inlined_call_operand.vmem [shape: f32[32,64], index: 0, kind: input, shape index: {}]   ;;  %s669_s1 = inlined_call_operand.vmem [shape: f32[64,32], index: 1, kind: input, shape index: {}]   ;;  %s670_s2 = inlined_call_operand.vmem [shape: f32[1,32], index: 2, kind: input, shape index: {}]   ;;  %s671_s3 = inlined_call_operand.hbm [shape: f32[32,32], index: 3, kind: output, shape index: {}]  }
   0x1   :  { %10 = vsyncpa [#allocation3 + $0x1], 0  ;;  %s539_s12 = smov 0   ;;  %s541_s13 = smov 0  }
   0x2   :  { %s543_s14 = smov 0   ;;  %s545_s15 = smov 0  }
   0x3 LB: > { %s560_s16 = sadd.s32 4294967295, %s514_s15   ;;  %s350_s17 = sadd.s32 4294967294, %s514_s15   ;;  %s514_s15 = sphi %s545_s15, %s677_s15   ;;  %s510_s14 = sphi %s543_s14, %s676_s14   ;;  %s506_s13 = sphi %s541_s13, %s675_s13   ;;  %s502_s12 = sphi %s539_s12, %s674_s12  }
   0x4   : > { %s564_s18 = sadd.s32 1, %s514_s15   ;;  %s91_s19 = sadd.s32 1, %s510_s14 }
   0x5   : > { %s88_s20 = ssub.s32 %s514_s15, %s564_s18  ;;  %p101_p0 = scmp.ne.s32.totalorder %s510_s14, %s506_s13 }
   0x6   : > { %p89_p1 = scmp.eq.s32.totalorder %s88_s20, 0  ;;  %p102_p2 = scmp.eq.s32.totalorder %s560_s16, 1 }
   0x7   : > { %p107_p3 = scmp.ne.s32.totalorder %s506_s13, %s502_s12  ;;  %p108_p4 = scmp.eq.s32.totalorder %s350_s17, 1 }
   0x8   : > { %s575_s21 = scalar_select %p89_p1, %s510_s14, %s91_s19  }
   0x9   : > { %p577_p5 = por %p102_p2, %p101_p0  ;;  %p581_p6 = por %p108_p4, %p107_p3 }
   0xa   : > { %p353_p7 = scmp.ge.s32.totalorder %s514_s15, 1  ;;  %p141_p8 = scmp.lt.s32.totalorder %s514_s15, 3 }
   0xc   : > { %p142_p9 = pnand %p353_p7, %p141_p8 }
   0xd   : > { %v174_v0 = vld [vmem:[%s669_s1] sm:$0xff] (!%p142_p9)  ;;  %v175_v1 = vld [vmem:[%s669_s1 + $0x8] sm:$0xff] (!%p142_p9)  ;;  %v176_v2 = vld [vmem:[%s669_s1 + $0x10] sm:$0xff] (!%p142_p9)  ;;  %s355_s30 = sshll.u32 (!%p142_p9), %s560_s16, 1  ;;  %vm189_vm0 = vcmask (!%p142_p9), 523264   ;;  %s162_s27 = sand.u32 (!%p142_p9), 1, %s506_s13  }
   0xe   : > { %145 = sbr.rel (%p142_p9) target bundleno = 262 (0x106), region = 32  ;;  %v395_v3 = vpack.c.bf16 (!%p142_p9), %v175_v1, %v174_v0  ;;  %v177_v4 = vld [vmem:[%s669_s1 + $0x18] sm:$0xff] (!%p142_p9)  ;;  %p166_p10 = scmp.lt.s32.totalorder (!%p142_p9), %s355_s30, 3  ;;  %v178_v6 = vld [vmem:[%s669_s1 + $0x20] sm:$0xff] (!%p142_p9)  ;;  %v179_v7 = vld [vmem:[%s669_s1 + $0x28] sm:$0xff] (!%p142_p9)  ;;  %vm271_vm1 = vcmask (!%p142_p9), 261120  }
   0xf   : > { %v399_v5 = vpack.c.bf16 (!%p142_p9), %v177_v4, %v176_v2  ;;  %v403_v8 = vpack.c.bf16 (!%p142_p9), %v179_v7, %v178_v6  ;;  %v180_v9 = vld [vmem:[%s669_s1 + $0x30] sm:$0xff] (!%p142_p9)  ;;  %v181_v10 = vld [vmem:[%s669_s1 + $0x38] sm:$0xff] (!%p142_p9)  ;;  %s354_s28 = sshll.u32 (!%p142_p9), %s162_s27, 4  ;;  %v357_v14 = vld [vmem:[%s670_s2] ss:$0 sm:$0xff] (!%p142_p9)  ;;  %s365_s6 = sshll.u32 (!%p142_p9), %s560_s16, 8 }
  0x10   : > { %396 = vmatprep.subr.bf16.mxu0 (!%p142_p9), %v395_v3  ;;  %v407_v12 = vpack.c.bf16 (!%p142_p9), %v181_v10, %v180_v9  ;;  %s164_s4 = scalar_lea.vmem (!%p142_p9), [#allocation2], %s354_s28  ;;  %s625_s9 = scalar_lea.hbm (!%p142_p9), %s671_s3, %s365_s6 }
  0x11   : > { %398 = vmatpush3.bf16.msra.mxu0 (!%p142_p9), %v395_v3  ;;  %s288_s5 = sshll.u32 (!%p142_p9), %s164_s4, 4  ;;  %s516_s11 = smov (!%p142_p9), [#allocation2]   ;;  %s620_s5 = int_to_ptr.vmem [resolvable:$true] %s288_s5 }
  0x12   : > { %400 = vmatprep.subr.bf16.mxu0 (!%p142_p9), %v399_v5  ;;  %s452_s16 = scalar_lea.vmem (!%p142_p9), %s620_s5, 256  ;;  %s456_s17 = sshll.u32 (!%p142_p9), %s516_s11, 4  ;;  %s457_s17 = int_to_ptr.vmem [resolvable:$false] %s456_s17 }
  0x13   : > { %p453_p11 = scmp.ne.s32.totalorder (!%p142_p9), %s620_s5, %s452_s16  ;;  %s458_s19 = scalar_lea.vmem (!%p142_p9), %s457_s17, 512 }
  0x14   : > { %p459_p0 = scmp.lt.s32.totalorder (!%p142_p9), %s620_s5, %s457_s17  ;;  %p460_p1 = scmp.lt.s32.totalorder (!%p142_p9), %s458_s19, %s452_s16 }
  0x15   : > { %s679_s30 = smov (!%p166_p10, %s355_s30), 3  ;;  %402 = vmatpush3.bf16.msra.mxu0 %v399_v5  ;;  %p454_p12 = pnand %p453_p11, %p577_p5 }
  0x16   : > { %s356_s10 = sshll.u32 %s679_s30, 3  ;;  %404 = vmatprep.subr.bf16.mxu0 %v403_v8  ;;  %p461_p2 = por %p460_p1, %p459_p0 }
  0x17   : > { %s169_s26 = scalar_lea.vmem %s668_s0, %s356_s10  ;;  %s627_s10 = scalar_lea.sflag [#allocation3], %s162_s27 }
  0x18   : > { %v172_v11 = vld [vmem:[%s169_s26] sm:$0xff]  ;;  %v173_v13 = vld [vmem:[%s169_s26 + $0x8] sm:$0xff]  ;;  %p455_p13 = pneg %p454_p12 }
  0x19   : > { %392 = vmatprep.mubr.msk.f32.mxu0 %vm189_vm0, %v172_v11  ;;  %406 = vmatpush3.bf16.msra.mxu0 %v403_v8 }
  0x1a   : > { %408 = vmatprep.subr.bf16.mxu0 %v407_v12  ;;  %p462_p3 = pnand %p461_p2, %p455_p13 }
  0x1d   : > { %410 = vmatpush3.bf16.msra.mxu0 %v407_v12 }
  0x20   : > { %393 = vmatmul.mubr.msk.f32.vlgmr.msra.gmra.mrb[0].mxu0 %vm189_vm0, %v173_v13 }
  0xf3   : > { %v394_v15 = vpop.f32.mrb[0].mxu0 }
  0xf4   : > { %v268_v16 = vadd.f32 %v394_v15, %v357_v14  ;;  %v262_v17 = vpop.f32.mrb[1].mxu0 }
  0xf5   : > { %v263_v18 = vadd.f32 %v357_v14, %v262_v17 }
  0xf6   : > { %273 = vst.msk [vmem:[%s164_s4 + $0x8] sm:$0xff] %vm271_vm1, %v268_v16 }
  0xf7   : > { %272 = vst.msk [vmem:[%s164_s4] sm:$0xff] %vm271_vm1, %v263_v18 }
  0xf8   : > { %465 = shalt.err (!%p462_p3)
}
  0xf9   : > { %s466_s20 = scalar_lea.hbm %s625_s9, 256  ;;  %s470_s26 = scalar_lea.hbm %s671_s3, 512 }
  0xfa   : > { %p467_p4 = scmp.ne.s32.totalorder %s625_s9, %s466_s20  ;;  %p471_p9 = scmp.lt.u32.totalorder %s625_s9, %s671_s3 }
  0xfb   : > { %p472_p10 = scmp.lt.u32.totalorder %s470_s26, %s466_s20  ;;  %p474_p12 = scmp.lt.u32.totalorder %s466_s20, %s625_s9 }
  0xfc   : > { %p468_p7 = pnand %p467_p4, %p577_p5 }
  0xfd   : > { %p473_p11 = por %p472_p10, %p471_p9 }
  0xfe   : > { %p469_p8 = pneg %p468_p7 }
  0xff   : > { %p475_p13 = por %p474_p12, %p473_p11 }
 0x101   : > { %p476_p0 = pnand %p475_p13, %p469_p8 }
 0x103   : > { %479 = shalt.err (!%p476_p0)
}
 0x104   : > { %s517_s29 = smov 128   ;;  %s518_s30 = smov 8  }
 0x105   : > { %411 = dma.vmem_to_hbm [thread:$0]  (%p577_p5), %s620_s5, 256, %s625_s9, %s627_s10, %s517_s29, %s517_s29, %s518_s30  }
 0x106 PF: > { %p417_p1 = scmp.ge.s32.totalorder %s514_s15, 2  ;;  %s303_s4 = sand.u32 1, %s502_s12  }
 0x107   : > { %s304_s6 = scalar_lea.sflag [#allocation3], %s303_s4 }
 0x108   : > { %p414_p2 = pnand %p417_p1, %p581_p6 }
 0x10a   : > { %497 = dma.done.wait (!%p414_p2), %s304_s6, 256  }
 0x10b   : > { %499 = vsyncadd (!%p414_p2), %s304_s6, 4294967040  ;;  %p13_p3 = scmp.ge.s32.totalorder %s564_s18, 4   ;;  %s674_s12 = smov %s506_s13 }
 0x10c   : > { %s675_s13 = smov %s510_s14  ;;  %s676_s14 = smov %s575_s21 }
 0x10d   : > { %s677_s15 = smov %s564_s18  ;;  %15 = sbr.rel (!%p13_p3) target bundleno = 3 (0x3), region = 67 }
 0x114   :  { %309 = vsyncpa [#allocation3], 1 }
 0x115   :  { %311 = vsyncpa [#allocation3 + $0x1], 1 }

</bundles_post_ra>
